<compile_context>
chip_gen: v7x
topology: tpu7x:2x2x1
jax: 0.10.0
libtpu: 0.0.40
codegen_flags: <defaults>
</compile_context>

<pallas_src>
import jax
import jax.numpy as jnp
from jax.experimental import pallas as pl
from jax.experimental.pallas import tpu as pltpu


def _round_up(n, m):
    return ((n + m - 1) // m) * m


def _cdiv(a, b):
    return -(-a // b)


def mia_kernel(x_ref, w1_ref, b1_ref, w2_ref, b2_ref, w3_ref, b3_ref, o_ref):
    # One batch tile per grid step; all weights/biases stay VMEM-resident across steps.
    # Cast the streamed x tile to bf16 in-register (no wrapper prepass over HBM).
    x = x_ref[...].astype(jnp.bfloat16)
    # Layer 1: bf16 x bf16 on the MXU, f32 accumulation; bias + ReLU in f32 (safe on v5e's VPU).
    h1 = jnp.dot(x, w1_ref[...], preferred_element_type=jnp.float32)
    h1 = jnp.maximum(h1 + b1_ref[...], 0.0)
    # Layers 2/3: bf16 operands, f32 accumulation (accuracy unaffected, smaller vreg footprint).
    h2 = jnp.dot(h1.astype(jnp.bfloat16), w2_ref[...], preferred_element_type=jnp.float32)
    h2 = jnp.maximum(h2 + b2_ref[...], 0.0)
    out = jnp.dot(h2.astype(jnp.bfloat16), w3_ref[...],
                  preferred_element_type=jnp.float32) + b3_ref[...]
    # Narrow (tm, 2) store — 8 B/row instead of a 512 B/row zero-padded slab.
    o_ref[...] = out.astype(o_ref.dtype)


def _choose_tile(B, F, block_m):
    """Rows per grid step: ~2 MiB of x per tile, sublane-aligned, balanced even grid."""
    row_bytes = _round_up(F, 128) * 4                 # f32 x row, lane-padded in VMEM
    byte_rows = max(512, (2 << 20) // row_bytes)      # ~2 MiB target per streamed tile
    cap = byte_rows if block_m is None else min(block_m, byte_rows)
    cap = max(8, _round_up(cap, 8))
    if B <= cap:
        return _round_up(B, 8)                        # single tile
    steps = _cdiv(B, cap)
    if steps % 2:                                     # even #steps -> balanced across 2 TCs (v7x)
        steps += 1
    return _round_up(_cdiv(B, steps), 8)              # divides B in the common case -> no jnp.pad


def _vmem_limit(tm, F):
    f_pad = _round_up(F, 128)
    x_buf = 2 * tm * f_pad * 4          # double-buffered streamed x tile (native f32, lane-padded)
    o_buf = 2 * tm * 128 * 4            # double-buffered (tm, 2) out tile (lane-padded in VMEM)
    inter = 3 * tm * 128 * 4            # h1/h2/logits temporaries, f32 upper bound
    weights = 1 << 20                   # resident weights/biases at these sizes + slack
    need = x_buf + o_buf + inter + weights
    try:
        cap = pltpu.get_tpu_info().vmem_capacity_bytes   # 64 MiB on v7x, 128 MiB on v5e/v6e
    except Exception:
        cap = 64 << 20                                   # conservative per-TC fallback
    return int(min(max(2 * need, 16 << 20), int(0.75 * cap)))


def mia_classifier_forward(x, params, *, block_m=None):
    """x: [B, F]. params: weights stored (in, out), biases (1, out). Returns [B, 2] float32."""
    B, F = x.shape
    f32, bf16 = jnp.float32, jnp.bfloat16

    # Weights in bf16 (tiny one-time cast), biases in f32 for the VPU add/ReLU.
    w1 = params["w1"].astype(bf16); b1 = params["b1"].astype(f32)
    w2 = params["w2"].astype(bf16); b2 = params["b2"].astype(f32)
    w3 = params["w3"].astype(bf16); b3 = params["b3"].astype(f32)
    n_out = w3.shape[1]
    h1d, h2d = w1.shape[1], w2.shape[1]

    tm = _choose_tile(B, F, block_m)
    b_pad = _round_up(B, tm)
    xs = x if b_pad == B else jnp.pad(x, ((0, b_pad - B), (0, 0)))
    grid = (b_pad // tm,)

    flops = 2 * b_pad * (F * h1d + h1d * h2d + h2d * n_out)
    bytes_accessed = (
        b_pad * F * x.dtype.itemsize                    # x stream, native dtype
        + (w1.size + w2.size + w3.size) * 2             # bf16 weights (resident)
        + (b1.size + b2.size + b3.size) * 4             # f32 biases
        + b_pad * n_out * 4                             # unpadded 2-column output
    )

    def run(single_buffer_weights):
        if single_buffer_weights:
            # Grid-invariant operands: single buffer (no pointless double-buffer VMEM).
            resident = lambda a: pl.BlockSpec(a.shape, lambda i: (0, 0),
                                              pipeline_mode=pl.Buffered(1))
        else:
            resident = lambda a: pl.BlockSpec(a.shape, lambda i: (0, 0))
        return pl.pallas_call(
            mia_kernel,
            out_shape=jax.ShapeDtypeStruct((b_pad, n_out), f32),
            grid=grid,
            in_specs=[
                pl.BlockSpec((tm, F), lambda i: (i, 0)),    # streamed batch tile
                resident(w1), resident(b1),
                resident(w2), resident(b2),
                resident(w3), resident(b3),
            ],
            out_specs=pl.BlockSpec((tm, n_out), lambda i: (i, 0)),
            compiler_params=pltpu.CompilerParams(
                dimension_semantics=("parallel",),          # batch axis shards across v7x's 2 TCs
                vmem_limit_bytes=_vmem_limit(tm, F),
            ),
            cost_estimate=pl.CostEstimate(
                flops=flops, transcendentals=0, bytes_accessed=bytes_accessed),
        )(xs, w1, b1, w2, b2, w3, b3)

    try:
        out = run(single_buffer_weights=True)
    except Exception:
        # Pallas version without single-buffer pipeline_mode support: default double-buffering.
        out = run(single_buffer_weights=False)

    # Padded rows carry garbage (bias-only) logits; only the row slice is returned.
    return out if b_pad == B else out[:B]


def init_params(key, input_size):
    """Deterministic synthetic init matching nn.Linear shapes (stored transposed: [in, out])."""
    ks = jax.random.split(key, 6)

    def linear(kw, kb, fan_in, fan_out):
        bound = 1.0 / jnp.sqrt(fan_in)
        w = jax.random.uniform(kw, (fan_in, fan_out), jnp.float32, -bound, bound)
        b = jax.random.uniform(kb, (1, fan_out), jnp.float32, -bound, bound)
        return w, b

    w1, b1 = linear(ks[0], ks[1], input_size, 64)
    w2, b2 = linear(ks[2], ks[3], 64, 32)
    w3, b3 = linear(ks[4], ks[5], 32, 2)
    return {"w1": w1, "b1": b1, "w2": w2, "b2": b2, "w3": w3, "b3": b3}


def reference_forward(x, p):
    # Mirrors the kernel's dtype plan: bf16 matmul operands, f32 accumulation, f32 bias/ReLU.
    hp = jax.lax.Precision.HIGHEST
    bf = lambda a: a.astype(jnp.bfloat16).astype(jnp.float32)
    h1 = jnp.maximum(jnp.dot(bf(x), bf(p["w1"]), precision=hp) + p["b1"], 0.0)
    h2 = jnp.maximum(jnp.dot(bf(h1), bf(p["w2"]), precision=hp) + p["b2"], 0.0)
    return jnp.dot(bf(h2), bf(p["w3"]), precision=hp) + p["b3"]


if __name__ == "__main__":
    key = jax.random.PRNGKey(0)
    k_x, k_p = jax.random.split(key)

    batch, input_size = 8, 32
    x = jax.random.normal(k_x, (batch, input_size), jnp.float32)
    params = init_params(k_p, input_size)

    out = jax.block_until_ready(mia_classifier_forward(x, params))
    ref = reference_forward(x, params)
    assert out.shape == (batch, 2)
    assert jnp.allclose(out, ref, atol=3e-3, rtol=3e-3), float(jnp.max(jnp.abs(out - ref)))

    # Multi-tile path: block_m=128 -> tm=96, 4 balanced grid steps, no x padding, no jnp.pad pass.
    x_big = jax.random.normal(k_x, (384, input_size), jnp.float32)
    out_big = jax.block_until_ready(mia_classifier_forward(x_big, params, block_m=128))
    ref_big = reference_forward(x_big, params)
    assert out_big.shape == (384, 2)
    assert jnp.allclose(out_big, ref_big, atol=3e-3, rtol=3e-3), \
        float(jnp.max(jnp.abs(out_big - ref_big)))

    print("KERNEL_OK")
</pallas_src>

<mosaic_0001>
module attributes {stable_mosaic.version = 11 : i64} {
  func.func @mia_kernel(%arg0: i32, %arg1: memref<8x32xf32, #tpu.memory_space<vmem>>, %arg2: memref<32x64xbf16, #tpu.memory_space<vmem>>, %arg3: memref<1x64xf32, #tpu.memory_space<vmem>>, %arg4: memref<64x32xbf16, #tpu.memory_space<vmem>>, %arg5: memref<1x32xf32, #tpu.memory_space<vmem>>, %arg6: memref<32x2xbf16, #tpu.memory_space<vmem>>, %arg7: memref<1x2xf32, #tpu.memory_space<vmem>>, %arg8: memref<8x2xf32, #tpu.memory_space<vmem>>) attributes {dimension_semantics = [#tpu.dimension_semantics<parallel>], iteration_bounds = array<i64: 1>, scalar_prefetch = 0 : i64, scratch_operands = 0 : i64, tpu.core_type = #tpu.core_type<tc>, window_params = [{transform_indices = @transform_0, window_bounds = array<i64: 8, 32>}, {pipeline_mode = #tpu.pipeline_mode<synchronous>, transform_indices = @transform_1, window_bounds = array<i64: 32, 64>}, {pipeline_mode = #tpu.pipeline_mode<synchronous>, transform_indices = @transform_2, window_bounds = array<i64: 1, 64>}, {pipeline_mode = #tpu.pipeline_mode<synchronous>, transform_indices = @transform_3, window_bounds = array<i64: 64, 32>}, {pipeline_mode = #tpu.pipeline_mode<synchronous>, transform_indices = @transform_4, window_bounds = array<i64: 1, 32>}, {pipeline_mode = #tpu.pipeline_mode<synchronous>, transform_indices = @transform_5, window_bounds = array<i64: 32, 2>}, {pipeline_mode = #tpu.pipeline_mode<synchronous>, transform_indices = @transform_6, window_bounds = array<i64: 1, 2>}, {transform_indices = @transform_7, window_bounds = array<i64: 8, 2>}]} {
    %c0 = arith.constant 0 : index
    %c0_0 = arith.constant 0 : index
    %0 = vector.load %arg1[%c0, %c0_0] : memref<8x32xf32, #tpu.memory_space<vmem>>, vector<8x32xf32>
    %1 = arith.truncf %0 : vector<8x32xf32> to vector<8x32xbf16>
    %c0_1 = arith.constant 0 : index
    %c0_2 = arith.constant 0 : index
    %2 = vector.load %arg2[%c0_1, %c0_2] : memref<32x64xbf16, #tpu.memory_space<vmem>>, vector<32x64xbf16>
    %cst = arith.constant dense<0.000000e+00> : vector<8x64xf32>
    %3 = tpu.matmul %1, %2, %cst {dimension_numbers = #tpu.dot_dimension_numbers<[1], [0], [0], [1], [0, 0, 1, 1], [], []>} : vector<8x32xbf16>, vector<32x64xbf16>, vector<8x64xf32> -> vector<8x64xf32>
    %c0_3 = arith.constant 0 : index
    %c0_4 = arith.constant 0 : index
    %4 = vector.load %arg3[%c0_3, %c0_4] : memref<1x64xf32, #tpu.memory_space<vmem>>, vector<1x64xf32>
    %5 = vector.broadcast %4 : vector<1x64xf32> to vector<8x64xf32>
    %6 = arith.addf %3, %5 : vector<8x64xf32>
    %cst_5 = arith.constant 0.000000e+00 : f32
    %7 = vector.broadcast %cst_5 : f32 to vector<8x64xf32>
    %8 = arith.maximumf %6, %7 : vector<8x64xf32>
    %9 = arith.truncf %8 : vector<8x64xf32> to vector<8x64xbf16>
    %c0_6 = arith.constant 0 : index
    %c0_7 = arith.constant 0 : index
    %10 = vector.load %arg4[%c0_6, %c0_7] : memref<64x32xbf16, #tpu.memory_space<vmem>>, vector<64x32xbf16>
    %cst_8 = arith.constant dense<0.000000e+00> : vector<8x32xf32>
    %11 = tpu.matmul %9, %10, %cst_8 {dimension_numbers = #tpu.dot_dimension_numbers<[1], [0], [0], [1], [0, 0, 1, 1], [], []>} : vector<8x64xbf16>, vector<64x32xbf16>, vector<8x32xf32> -> vector<8x32xf32>
    %c0_9 = arith.constant 0 : index
    %c0_10 = arith.constant 0 : index
    %12 = vector.load %arg5[%c0_9, %c0_10] : memref<1x32xf32, #tpu.memory_space<vmem>>, vector<1x32xf32>
    %13 = vector.broadcast %12 : vector<1x32xf32> to vector<8x32xf32>
    %14 = arith.addf %11, %13 : vector<8x32xf32>
    %cst_11 = arith.constant 0.000000e+00 : f32
    %15 = vector.broadcast %cst_11 : f32 to vector<8x32xf32>
    %16 = arith.maximumf %14, %15 : vector<8x32xf32>
    %17 = arith.truncf %16 : vector<8x32xf32> to vector<8x32xbf16>
    %c0_12 = arith.constant 0 : index
    %c0_13 = arith.constant 0 : index
    %18 = vector.load %arg6[%c0_12, %c0_13] : memref<32x2xbf16, #tpu.memory_space<vmem>>, vector<32x2xbf16>
    %cst_14 = arith.constant dense<0.000000e+00> : vector<8x2xf32>
    %19 = tpu.matmul %17, %18, %cst_14 {dimension_numbers = #tpu.dot_dimension_numbers<[1], [0], [0], [1], [0, 0, 1, 1], [], []>} : vector<8x32xbf16>, vector<32x2xbf16>, vector<8x2xf32> -> vector<8x2xf32>
    %c0_15 = arith.constant 0 : index
    %c0_16 = arith.constant 0 : index
    %20 = vector.load %arg7[%c0_15, %c0_16] : memref<1x2xf32, #tpu.memory_space<vmem>>, vector<1x2xf32>
    %21 = vector.broadcast %20 : vector<1x2xf32> to vector<8x2xf32>
    %22 = arith.addf %19, %21 : vector<8x2xf32>
    %c0_17 = arith.constant 0 : index
    %c0_18 = arith.constant 0 : index
    %23 = vector.load %arg8[%c0_17, %c0_18] : memref<8x2xf32, #tpu.memory_space<vmem>>, vector<8x2xf32>
    tpu.vector_store %arg8[%c0_17, %c0_18], %22 {strides = array<i32>} : memref<8x2xf32, #tpu.memory_space<vmem>>, vector<8x2xf32>,
    return
  }
  func.func @transform_0(%arg0: i32) -> (i32, i32) {
    %c0_i32 = arith.constant 0 : i32
    %c0_i32_0 = arith.constant 0 : i32
    return %arg0, %c0_i32 : i32, i32
  }
  func.func @transform_1(%arg0: i32) -> (i32, i32) {
    %c0_i32 = arith.constant 0 : i32
    %c0_i32_0 = arith.constant 0 : i32
    %c0_i32_1 = arith.constant 0 : i32
    return %c0_i32, %c0_i32_0 : i32, i32
  }
  func.func @transform_2(%arg0: i32) -> (i32, i32) {
    %c0_i32 = arith.constant 0 : i32
    %c0_i32_0 = arith.constant 0 : i32
    %c0_i32_1 = arith.constant 0 : i32
    return %c0_i32, %c0_i32_0 : i32, i32
  }
  func.func @transform_3(%arg0: i32) -> (i32, i32) {
    %c0_i32 = arith.constant 0 : i32
    %c0_i32_0 = arith.constant 0 : i32
    %c0_i32_1 = arith.constant 0 : i32
    return %c0_i32, %c0_i32_0 : i32, i32
  }
  func.func @transform_4(%arg0: i32) -> (i32, i32) {
    %c0_i32 = arith.constant 0 : i32
    %c0_i32_0 = arith.constant 0 : i32
    %c0_i32_1 = arith.constant 0 : i32
    return %c0_i32, %c0_i32_0 : i32, i32
  }
  func.func @transform_5(%arg0: i32) -> (i32, i32) {
    %c0_i32 = arith.constant 0 : i32
    %c0_i32_0 = arith.constant 0 : i32
    %c0_i32_1 = arith.constant 0 : i32
    return %c0_i32, %c0_i32_0 : i32, i32
  }
  func.func @transform_6(%arg0: i32) -> (i32, i32) {
    %c0_i32 = arith.constant 0 : i32
    %c0_i32_0 = arith.constant 0 : i32
    %c0_i32_1 = arith.constant 0 : i32
    return %c0_i32, %c0_i32_0 : i32, i32
  }
  func.func @transform_7(%arg0: i32) -> (i32, i32) {
    %c0_i32 = arith.constant 0 : i32
    %c0_i32_0 = arith.constant 0 : i32
    return %arg0, %c0_i32 : i32, i32
  }
}

module attributes {stable_mosaic.version = 11 : i64} {
  func.func @mia_kernel(%arg0: i32, %arg1: memref<8x32xf32, #tpu.memory_space<vmem>>, %arg2: memref<32x64xbf16, #tpu.memory_space<vmem>>, %arg3: memref<1x64xf32, #tpu.memory_space<vmem>>, %arg4: memref<64x32xbf16, #tpu.memory_space<vmem>>, %arg5: memref<1x32xf32, #tpu.memory_space<vmem>>, %arg6: memref<32x2xbf16, #tpu.memory_space<vmem>>, %arg7: memref<1x2xf32, #tpu.memory_space<vmem>>, %arg8: memref<8x2xf32, #tpu.memory_space<vmem>>) attributes {dimension_semantics = [#tpu.dimension_semantics<parallel>], iteration_bounds = array<i64: 1>, scalar_prefetch = 0 : i64, scratch_operands = 0 : i64, tpu.core_type = #tpu.core_type<tc>, window_params = [{transform_indices = @transform_0, window_bounds = array<i64: 8, 32>}, {pipeline_mode = #tpu.pipeline_mode<synchronous>, transform_indices = @transform_1, window_bounds = array<i64: 32, 64>}, {pipeline_mode = #tpu.pipeline_mode<synchronous>, transform_indices = @transform_2, window_bounds = array<i64: 1, 64>}, {pipeline_mode = #tpu.pipeline_mode<synchronous>, transform_indices = @transform_3, window_bounds = array<i64: 64, 32>}, {pipeline_mode = #tpu.pipeline_mode<synchronous>, transform_indices = @transform_4, window_bounds = array<i64: 1, 32>}, {pipeline_mode = #tpu.pipeline_mode<synchronous>, transform_indices = @transform_5, window_bounds = array<i64: 32, 2>}, {pipeline_mode = #tpu.pipeline_mode<synchronous>, transform_indices = @transform_6, window_bounds = array<i64: 1, 2>}, {transform_indices = @transform_7, window_bounds = array<i64: 8, 2>}]} {
    %c0 = arith.constant 0 : index
    %c0_0 = arith.constant 0 : index
    %0 = vector.load %arg1[%c0, %c0_0] : memref<8x32xf32, #tpu.memory_space<vmem>>, vector<8x32xf32>
    %1 = arith.truncf %0 : vector<8x32xf32> to vector<8x32xbf16>
    %c0_1 = arith.constant 0 : index
    %c0_2 = arith.constant 0 : index
    %2 = vector.load %arg2[%c0_1, %c0_2] : memref<32x64xbf16, #tpu.memory_space<vmem>>, vector<32x64xbf16>
    %cst = arith.constant dense<0.000000e+00> : vector<8x64xf32>
    %3 = tpu.matmul %1, %2, %cst {dimension_numbers = #tpu.dot_dimension_numbers<[1], [0], [0], [1], [0, 0, 1, 1], [], []>} : vector<8x32xbf16>, vector<32x64xbf16>, vector<8x64xf32> -> vector<8x64xf32>
    %c0_3 = arith.constant 0 : index
    %c0_4 = arith.constant 0 : index
    %4 = vector.load %arg3[%c0_3, %c0_4] : memref<1x64xf32, #tpu.memory_space<vmem>>, vector<1x64xf32>
    %5 = vector.broadcast %4 : vector<1x64xf32> to vector<8x64xf32>
    %6 = arith.addf %3, %5 : vector<8x64xf32>
    %cst_5 = arith.constant 0.000000e+00 : f32
    %7 = vector.broadcast %cst_5 : f32 to vector<8x64xf32>
    %8 = arith.maximumf %6, %7 : vector<8x64xf32>
    %9 = arith.truncf %8 : vector<8x64xf32> to vector<8x64xbf16>
    %c0_6 = arith.constant 0 : index
    %c0_7 = arith.constant 0 : index
    %10 = vector.load %arg4[%c0_6, %c0_7] : memref<64x32xbf16, #tpu.memory_space<vmem>>, vector<64x32xbf16>
    %cst_8 = arith.constant dense<0.000000e+00> : vector<8x32xf32>
    %11 = tpu.matmul %9, %10, %cst_8 {dimension_numbers = #tpu.dot_dimension_numbers<[1], [0], [0], [1], [0, 0, 1, 1], [], []>} : vector<8x64xbf16>, vector<64x32xbf16>, vector<8x32xf32> -> vector<8x32xf32>
    %c0_9 = arith.constant 0 : index
    %c0_10 = arith.constant 0 : index
    %12 = vector.load %arg5[%c0_9, %c0_10] : memref<1x32xf32, #tpu.memory_space<vmem>>, vector<1x32xf32>
    %13 = vector.broadcast %12 : vector<1x32xf32> to vector<8x32xf32>
    %14 = arith.addf %11, %13 : vector<8x32xf32>
    %cst_11 = arith.constant 0.000000e+00 : f32
    %15 = vector.broadcast %cst_11 : f32 to vector<8x32xf32>
    %16 = arith.maximumf %14, %15 : vector<8x32xf32>
    %17 = arith.truncf %16 : vector<8x32xf32> to vector<8x32xbf16>
    %c0_12 = arith.constant 0 : index
    %c0_13 = arith.constant 0 : index
    %18 = vector.load %arg6[%c0_12, %c0_13] : memref<32x2xbf16, #tpu.memory_space<vmem>>, vector<32x2xbf16>
    %cst_14 = arith.constant dense<0.000000e+00> : vector<8x2xf32>
    %19 = tpu.matmul %17, %18, %cst_14 {dimension_numbers = #tpu.dot_dimension_numbers<[1], [0], [0], [1], [0, 0, 1, 1], [], []>} : vector<8x32xbf16>, vector<32x2xbf16>, vector<8x2xf32> -> vector<8x2xf32>
    %c0_15 = arith.constant 0 : index
    %c0_16 = arith.constant 0 : index
    %20 = vector.load %arg7[%c0_15, %c0_16] : memref<1x2xf32, #tpu.memory_space<vmem>>, vector<1x2xf32>
    %21 = vector.broadcast %20 : vector<1x2xf32> to vector<8x2xf32>
    %22 = arith.addf %19, %21 : vector<8x2xf32>
    %c0_17 = arith.constant 0 : index
    %c0_18 = arith.constant 0 : index
    %23 = vector.load %arg8[%c0_17, %c0_18] : memref<8x2xf32, #tpu.memory_space<vmem>>, vector<8x2xf32>
    tpu.vector_store %arg8[%c0_17, %c0_18], %22 {strides = array<i32>} : memref<8x2xf32, #tpu.memory_space<vmem>>, vector<8x2xf32>,
    return
  }
  func.func @transform_0(%arg0: i32) -> (i32, i32) {
    %c0_i32 = arith.constant 0 : i32
    %c0_i32_0 = arith.constant 0 : i32
    return %arg0, %c0_i32 : i32, i32
  }
  func.func @transform_1(%arg0: i32) -> (i32, i32) {
    %c0_i32 = arith.constant 0 : i32
    %c0_i32_0 = arith.constant 0 : i32
    %c0_i32_1 = arith.constant 0 : i32
    return %c0_i32, %c0_i32_0 : i32, i32
  }
  func.func @transform_2(%arg0: i32) -> (i32, i32) {
    %c0_i32 = arith.constant 0 : i32
    %c0_i32_0 = arith.constant 0 : i32
    %c0_i32_1 = arith.constant 0 : i32
    return %c0_i32, %c0_i32_0 : i32, i32
  }
  func.func @transform_3(%arg0: i32) -> (i32, i32) {
    %c0_i32 = arith.constant 0 : i32
    %c0_i32_0 = arith.constant 0 : i32
    %c0_i32_1 = arith.constant 0 : i32
    return %c0_i32, %c0_i32_0 : i32, i32
  }
  func.func @transform_4(%arg0: i32) -> (i32, i32) {
    %c0_i32 = arith.constant 0 : i32
    %c0_i32_0 = arith.constant 0 : i32
    %c0_i32_1 = arith.constant 0 : i32
    return %c0_i32, %c0_i32_0 : i32, i32
  }
  func.func @transform_5(%arg0: i32) -> (i32, i32) {
    %c0_i32 = arith.constant 0 : i32
    %c0_i32_0 = arith.constant 0 : i32
    %c0_i32_1 = arith.constant 0 : i32
    return %c0_i32, %c0_i32_0 : i32, i32
  }
  func.func @transform_6(%arg0: i32) -> (i32, i32) {
    %c0_i32 = arith.constant 0 : i32
    %c0_i32_0 = arith.constant 0 : i32
    %c0_i32_1 = arith.constant 0 : i32
    return %c0_i32, %c0_i32_0 : i32, i32
  }
  func.func @transform_7(%arg0: i32) -> (i32, i32) {
    %c0_i32 = arith.constant 0 : i32
    %c0_i32_0 = arith.constant 0 : i32
    return %arg0, %c0_i32 : i32, i32
  }
}

</mosaic_0001>

<bundles_post_ra>
// kernel: tpu_custom_call.1
= control target key start
LH: loop header
LB: loop body
LE: loop exit
PB: predicated region body
PF: predicated region fallthrough
CT: control target
= control target key end

     0   :  { %v318_v0 = vmov 0.0   ;;  %vm319_vm0 = vmmov 0   ;;  %vm52_vm1 = vcmask 261120   ;;  %vm137_vm2 = vcmask 523264   ;;  %s404_s1 = inlined_call_operand.vmem [shape: bf16[32,64], index: 1, kind: input, shape index: {}]   ;;  %s405_s0 = inlined_call_operand.vmem [shape: f32[8,32], index: 0, kind: input, shape index: {}]   ;;  %s406_s3 = inlined_call_operand.vmem [shape: bf16[64,32], index: 3, kind: input, shape index: {}]   ;;  %s407_s5 = inlined_call_operand.vmem [shape: bf16[32,2], index: 5, kind: input, shape index: {}]   ;;  %s408_s2 = inlined_call_operand.vmem [shape: f32[1,64], index: 2, kind: input, shape index: {}]   ;;  %s409_s4 = inlined_call_operand.vmem [shape: f32[1,32], index: 4, kind: input, shape index: {}]   ;;  %s410_s6 = inlined_call_operand.vmem [shape: f32[1,2], index: 6, kind: input, shape index: {}]   ;;  %s411_s7 = inlined_call_operand.vmem [shape: f32[8,2], index: 7, kind: output, shape index: {}]  }
   0x1   :  { %280 = vmatprep.subr.bf16.mxu0 %v318_v0  ;;  %v310_v1 = vld [vmem:[%s404_s1] sm:$0xff]   ;;  %284 = vmatprep.mubr.msk.bf16.mxu0 %vm319_vm0, %v318_v0  ;;  %v311_v2 = vld [vmem:[%s404_s1 + $0x8] sm:$0xff]   ;;  %v314_v7 = vld [vmem:[%s406_s3 + $0x10] sm:$0xff]   ;;  %vm249_vm3 = vcmask 15360  }
   0x2   :  { %288 = vmatprep.subr.bf16.mxu1 %v318_v0  ;;  %296 = vmatprep.mubr.msk.bf16.mxu1 %vm319_vm0, %v318_v0  ;;  %v27_v3 = vld [vmem:[%s405_s0] sm:$0xff]  ;;  %v313_v5 = vld [vmem:[%s406_s3 + $0x8] sm:$0xff]   ;;  %v315_v8 = vld [vmem:[%s406_s3 + $0x18] sm:$0xff]  }
   0x3   :  { %281 = vmatpush3.bf16.msra.mxu0 %v310_v1  ;;  %v312_v4 = vld [vmem:[%s406_s3] sm:$0xff]   ;;  %v28_v6 = vpack.c.bf16 %v27_v3, %v27_v3  ;;  %v317_v18 = vld [vmem:[%s407_s5 + $0x8] sm:$0xff]  }
   0x4   :  { %282 = vmatprep.subr.bf16.mxu0 %v318_v0  ;;  %289 = vmatpush3.bf16.msra.mxu1 %v312_v4  ;;  %v316_v9 = vld [vmem:[%s407_s5] sm:$0xff]  }
   0x5   :  { %290 = vmatprep.subr.bf16.mxu1 %v318_v0  ;;  %v255_v10 = vld [vmem:[%s408_s2] ss:$0 sm:$0xff] }
   0x6   :  { %v259_v19 = vld [vmem:[%s409_s4] ss:$0 sm:$0xff] }
   0x7   :  { %283 = vmatpush3.bf16.msra.mxu0 %v311_v2  ;;  %v265_v27 = vld [vmem:[%s410_s6] ss:$0 sm:$0xff] }
   0x8   :  { %300 = vmatprep.subr.bf16.mxu0 %v318_v0  ;;  %291 = vmatpush3.bf16.msra.mxu1 %v313_v5 }
   0x9   :  { %292 = vmatprep.subr.bf16.mxu1 %v318_v0 }
   0xa   :  { %285 = vmatmul.mubr.msk.bf16.vlgmr.msra.gmra.mrb[0].mxu0 %vm52_vm1, %v28_v6 }
   0xb   :  { %304 = vmatprep.mubr.msk.bf16.mxu0 %vm319_vm0, %v318_v0  ;;  %301 = vmatpush3.bf16.msra.mxu0 %v316_v9 }
   0xc   :  { %293 = vmatpush3.bf16.msra.mxu1 %v314_v7  ;;  %302 = vmatprep.subr.bf16.mxu0 %v318_v0 }
   0xd   :  { %294 = vmatprep.subr.bf16.mxu1 %v318_v0 }
   0xf   :  { %303 = vmatpush3.bf16.msra.mxu0 %v317_v18 }
  0x10   :  { %295 = vmatpush3.bf16.msra.mxu1 %v315_v8 }
  0xdd   :  { %v90_v11 = vpop.f32.mrb[0].mxu0 }
  0xde   :  { %v91_v12 = vadd.f32 %v255_v10, %v90_v11  ;;  %v286_v13 = vpop.f32.mrb[1].mxu0 }
  0xdf   :  { %v93_v14 = vpop.f32.mrb[2].mxu0 }
  0xe0   :  { %v96_v15 = vmax.f32 %v91_v12, 0.0  ;;  %v287_v16 = vpop.f32.mrb[3].mxu0 }
  0xe2   :  { %v97_v17 = vpack.c.bf16 %v96_v15, %v96_v15 }
  0xe4   :  { %297 = vmatmul.mubr.msk.bf16.vlgmr.msra.gmra.mrb[0].mxu1 %vm137_vm2, %v97_v17 }
 0x1b7   :  { %v175_v20 = vpop.f32.mrb[0].mxu1 }
 0x1b8   :  { %v176_v21 = vadd.f32 %v259_v19, %v175_v20  ;;  %v298_v22 = vpop.f32.mrb[1].mxu1 }
 0x1b9   :  { %v178_v23 = vpop.f32.mrb[2].mxu1 }
 0x1ba   :  { %v181_v24 = vmax.f32 %v176_v21, 0.0  ;;  %v299_v25 = vpop.f32.mrb[3].mxu1 }
 0x1bc   :  { %v182_v26 = vpack.c.bf16 %v181_v24, %v181_v24 }
 0x1be   :  { %305 = vmatmul.mubr.msk.bf16.vlgmr.msra.gmra.mrb[4].mxu0 %vm52_vm1, %v182_v26 }
 0x291   :  { %v243_v28 = vpop.f32.mrb[4].mxu0 }
 0x292   :  { %v244_v29 = vadd.f32 %v265_v27, %v243_v28  ;;  %v306_v30 = vpop.f32.mrb[5].mxu0 }
 0x293   :  { %v246_v31 = vpop.f32.mrb[6].mxu0 }
 0x294   :  { %250 = vst.msk [vmem:[%s411_s7] sm:$0xff] %vm249_vm3, %v244_v29  ;;  %v307_v32 = vpop.f32.mrb[7].mxu0 }

// kernel: tpu_custom_call.1
= control target key start
LH: loop header
LB: loop body
LE: loop exit
PB: predicated region body
PF: predicated region fallthrough
CT: control target
= control target key end

     0   :  { %v318_v0 = vmov 0.0   ;;  %vm319_vm0 = vmmov 0   ;;  %vm52_vm1 = vcmask 261120   ;;  %vm137_vm2 = vcmask 523264   ;;  %s404_s1 = inlined_call_operand.vmem [shape: bf16[32,64], index: 1, kind: input, shape index: {}]   ;;  %s405_s0 = inlined_call_operand.vmem [shape: f32[8,32], index: 0, kind: input, shape index: {}]   ;;  %s406_s3 = inlined_call_operand.vmem [shape: bf16[64,32], index: 3, kind: input, shape index: {}]   ;;  %s407_s5 = inlined_call_operand.vmem [shape: bf16[32,2], index: 5, kind: input, shape index: {}]   ;;  %s408_s2 = inlined_call_operand.vmem [shape: f32[1,64], index: 2, kind: input, shape index: {}]   ;;  %s409_s4 = inlined_call_operand.vmem [shape: f32[1,32], index: 4, kind: input, shape index: {}]   ;;  %s410_s6 = inlined_call_operand.vmem [shape: f32[1,2], index: 6, kind: input, shape index: {}]   ;;  %s411_s7 = inlined_call_operand.vmem [shape: f32[8,2], index: 7, kind: output, shape index: {}]  }
   0x1   :  { %280 = vmatprep.subr.bf16.mxu0 %v318_v0  ;;  %v310_v1 = vld [vmem:[%s404_s1] sm:$0xff]   ;;  %284 = vmatprep.mubr.msk.bf16.mxu0 %vm319_vm0, %v318_v0  ;;  %v311_v2 = vld [vmem:[%s404_s1 + $0x8] sm:$0xff]   ;;  %v314_v7 = vld [vmem:[%s406_s3 + $0x10] sm:$0xff]   ;;  %vm249_vm3 = vcmask 15360  }
   0x2   :  { %288 = vmatprep.subr.bf16.mxu1 %v318_v0  ;;  %296 = vmatprep.mubr.msk.bf16.mxu1 %vm319_vm0, %v318_v0  ;;  %v27_v3 = vld [vmem:[%s405_s0] sm:$0xff]  ;;  %v313_v5 = vld [vmem:[%s406_s3 + $0x8] sm:$0xff]   ;;  %v315_v8 = vld [vmem:[%s406_s3 + $0x18] sm:$0xff]  }
   0x3   :  { %281 = vmatpush3.bf16.msra.mxu0 %v310_v1  ;;  %v312_v4 = vld [vmem:[%s406_s3] sm:$0xff]   ;;  %v28_v6 = vpack.c.bf16 %v27_v3, %v27_v3  ;;  %v317_v18 = vld [vmem:[%s407_s5 + $0x8] sm:$0xff]  }
   0x4   :  { %282 = vmatprep.subr.bf16.mxu0 %v318_v0  ;;  %289 = vmatpush3.bf16.msra.mxu1 %v312_v4  ;;  %v316_v9 = vld [vmem:[%s407_s5] sm:$0xff]  }
   0x5   :  { %290 = vmatprep.subr.bf16.mxu1 %v318_v0  ;;  %v255_v10 = vld [vmem:[%s408_s2] ss:$0 sm:$0xff] }
   0x6   :  { %v259_v19 = vld [vmem:[%s409_s4] ss:$0 sm:$0xff] }
   0x7   :  { %283 = vmatpush3.bf16.msra.mxu0 %v311_v2  ;;  %v265_v27 = vld [vmem:[%s410_s6] ss:$0 sm:$0xff] }
   0x8   :  { %300 = vmatprep.subr.bf16.mxu0 %v318_v0  ;;  %291 = vmatpush3.bf16.msra.mxu1 %v313_v5 }
   0x9   :  { %292 = vmatprep.subr.bf16.mxu1 %v318_v0 }
   0xa   :  { %285 = vmatmul.mubr.msk.bf16.vlgmr.msra.gmra.mrb[0].mxu0 %vm52_vm1, %v28_v6 }
   0xb   :  { %304 = vmatprep.mubr.msk.bf16.mxu0 %vm319_vm0, %v318_v0  ;;  %301 = vmatpush3.bf16.msra.mxu0 %v316_v9 }
   0xc   :  { %293 = vmatpush3.bf16.msra.mxu1 %v314_v7  ;;  %302 = vmatprep.subr.bf16.mxu0 %v318_v0 }
   0xd   :  { %294 = vmatprep.subr.bf16.mxu1 %v318_v0 }
   0xf   :  { %303 = vmatpush3.bf16.msra.mxu0 %v317_v18 }
  0x10   :  { %295 = vmatpush3.bf16.msra.mxu1 %v315_v8 }
  0xdd   :  { %v90_v11 = vpop.f32.mrb[0].mxu0 }
  0xde   :  { %v91_v12 = vadd.f32 %v255_v10, %v90_v11  ;;  %v286_v13 = vpop.f32.mrb[1].mxu0 }
  0xdf   :  { %v93_v14 = vpop.f32.mrb[2].mxu0 }
  0xe0   :  { %v96_v15 = vmax.f32 %v91_v12, 0.0  ;;  %v287_v16 = vpop.f32.mrb[3].mxu0 }
  0xe2   :  { %v97_v17 = vpack.c.bf16 %v96_v15, %v96_v15 }
  0xe4   :  { %297 = vmatmul.mubr.msk.bf16.vlgmr.msra.gmra.mrb[0].mxu1 %vm137_vm2, %v97_v17 }
 0x1b7   :  { %v175_v20 = vpop.f32.mrb[0].mxu1 }
 0x1b8   :  { %v176_v21 = vadd.f32 %v259_v19, %v175_v20  ;;  %v298_v22 = vpop.f32.mrb[1].mxu1 }
 0x1b9   :  { %v178_v23 = vpop.f32.mrb[2].mxu1 }
 0x1ba   :  { %v181_v24 = vmax.f32 %v176_v21, 0.0  ;;  %v299_v25 = vpop.f32.mrb[3].mxu1 }
 0x1bc   :  { %v182_v26 = vpack.c.bf16 %v181_v24, %v181_v24 }
 0x1be   :  { %305 = vmatmul.mubr.msk.bf16.vlgmr.msra.gmra.mrb[4].mxu0 %vm52_vm1, %v182_v26 }
 0x291   :  { %v243_v28 = vpop.f32.mrb[4].mxu0 }
 0x292   :  { %v244_v29 = vadd.f32 %v265_v27, %v243_v28  ;;  %v306_v30 = vpop.f32.mrb[5].mxu0 }
 0x293   :  { %v246_v31 = vpop.f32.mrb[6].mxu0 }
 0x294   :  { %250 = vst.msk [vmem:[%s411_s7] sm:$0xff] %vm249_vm3, %v244_v29  ;;  %v307_v32 = vpop.f32.mrb[7].mxu0 }

</bundles_post_ra>
